<compile_context>
chip_gen: v6e
topology: v6e:2x2x1
jax: 0.10.0
libtpu: 0.0.40
codegen_flags: <defaults>
</compile_context>

<pallas_src>
import jax
import jax.numpy as jnp
from jax.experimental import pallas as pl
from jax.experimental.pallas import tpu as pltpu


def critic_kernel(state_ref, action_ref, w1s_ref, w1a_ref, b1_ref,
                  w2_ref, b2_ref, wq_ref, bq_ref, q_ref):
    c = pl.program_id(0)  # critic index (grid axis 0)

    # fc1 over the virtual concat [state, action]: split-weight form avoids
    # materializing the concatenation anywhere (host or VMEM).
    h1 = (
        jnp.dot(state_ref[...].astype(jnp.bfloat16), w1s_ref[...],
                preferred_element_type=jnp.float32)
        + jnp.dot(action_ref[...].astype(jnp.bfloat16), w1a_ref[...],
                  preferred_element_type=jnp.float32)
        + b1_ref[...]
    )
    h1 = jnp.maximum(h1, 0.0)

    # fc2 applied twice; relu only after the second (matches the reference).
    w2 = w2_ref[...]
    b2 = b2_ref[...]
    h2 = jnp.dot(h1.astype(jnp.bfloat16), w2,
                 preferred_element_type=jnp.float32) + b2
    h3 = jnp.dot(h2.astype(jnp.bfloat16), w2,
                 preferred_element_type=jnp.float32) + b2
    h3 = jnp.maximum(h3, 0.0)

    # q head: the (fc2 -> 1) matmul is lane-sparse on the MXU; do it on the
    # VPU (multiply) + XLU (lane reduction) instead.  wq is stored as (1, fc2).
    wq = wq_ref[...].astype(jnp.float32)
    q = jnp.sum(h3 * wq, axis=-1, keepdims=True) + bq_ref[c, 0]
    q_ref[...] = q.astype(q_ref.dtype)


def _batch_tiling(batch, max_tile=1024, min_grid=2, small_batch=64):
    """Pick (padded_batch, batch_tile).

    * batch <= small_batch: single grid step (inference-size path).
    * otherwise: largest multiple-of-8 tile <= max_tile that gives at least
      `min_grid` grid steps (so both v7x TensorCores get work) and divides the
      batch exactly; if no such divisor exists (odd/prime batch), zero-pad the
      batch to a multiple of a modest tile instead of one huge block.
    """
    if batch <= small_batch:
        return batch, batch
    cap = max(8, (min(max_tile, batch // min_grid) // 8) * 8)
    for tb in range(cap, 7, -8):
        if batch % tb == 0:
            return batch, tb
    tb = min(cap, 256)                    # bounds padding waste and VMEM use
    padded = -(-batch // tb) * tb
    return padded, tb


def _compiler_params(tile, fc1, fc2):
    # VMEM guard (matters most on v7x: 64 MiB physical / 32 MiB scoped
    # default).  Rough bytes for h1/h2/h3 (f32) + their bf16 MXU copies per
    # batch row, plus slack for double-buffered I/O and weights.
    est = tile * (fc1 + 2 * fc2) * 6 + (4 << 20)
    vmem_limit = None
    if est > (14 << 20):                  # above the conservative scoped default
        vmem_limit = min(2 * est, 40 << 20)   # stay well under v7x's 64 MiB
    return pltpu.CompilerParams(
        dimension_semantics=("parallel", "parallel"),
        vmem_limit_bytes=vmem_limit)


def critic_forward_stacked(state, action, params):
    """Run n critics (e.g. SAC twin / target critics) fused in ONE pallas_call.

    Every param array carries a leading critic axis (see stack_params).
    Returns q of shape (n_critics, B, 1).
    """
    w1s, w1a, b1, w2, b2, wq, bq = params
    n_critics, fc1, fc2 = w2.shape
    B, d_state = state.shape
    _, d_action = action.shape

    padded_b, tb = _batch_tiling(B)
    if padded_b != B:
        # Pathological (odd/prime) training batch: zero-pad rows; the padded
        # rows are sliced off below.
        state = jnp.pad(state, ((0, padded_b - B), (0, 0)))
        action = jnp.pad(action, ((0, padded_b - B), (0, 0)))

    grid = (n_critics, padded_b // tb)

    batch_map = lambda c, i: (i, 0)        # tiles the batch axis
    weight_map = lambda c, i: (c, 0, 0)    # per-critic weights, resident across batch tiles

    out = pl.pallas_call(
        critic_kernel,
        out_shape=jax.ShapeDtypeStruct((n_critics, padded_b, 1), jnp.float32),
        grid=grid,
        in_specs=[
            pl.BlockSpec((tb, d_state), batch_map),              # state
            pl.BlockSpec((tb, d_action), batch_map),             # action
            pl.BlockSpec((None, d_state, fc1), weight_map),      # w1 (state rows), bf16
            pl.BlockSpec((None, d_action, fc1), weight_map),     # w1 (action rows), bf16
            pl.BlockSpec((None, 1, fc1), weight_map),            # b1, f32
            pl.BlockSpec((None, fc1, fc2), weight_map),          # w2, bf16
            pl.BlockSpec((None, 1, fc2), weight_map),            # b2, f32
            pl.BlockSpec((None, 1, fc2), weight_map),            # wq (1, fc2), bf16
            pl.BlockSpec(memory_space=pltpu.MemorySpace.SMEM),   # bq (n, 1) scalars
        ],
        out_specs=pl.BlockSpec((None, tb, 1), lambda c, i: (c, i, 0)),
        compiler_params=_compiler_params(tb, fc1, fc2),
    )(state, action, w1s, w1a, b1, w2, b2, wq, bq)

    return out[:, :B] if padded_b != B else out


def critic_forward(state, action, params):
    """Single-critic forward (n_critics == 1 case of the fused kernel)."""
    stacked = tuple(p[None] for p in params)
    return critic_forward_stacked(state, action, stacked)[0]


def stack_params(params_list):
    """Stack per-critic param tuples on a leading critic axis."""
    return tuple(jnp.stack(ps) for ps in zip(*params_list))


def init_params(key, input_dim, n_actions, fc1_dims=256, fc2_dims=256):
    """PyTorch nn.Linear-style init (U[-1/sqrt(fan_in), 1/sqrt(fan_in)]).

    Kernel-friendly storage layout ("in, out", i.e. transposed vs. PyTorch):
      w1 split into w1s (input_dim, fc1) and w1a (n_actions, fc1)  -- bf16
      w2 (fc1, fc2) bf16;   wq (1, fc2) bf16
      b1 (1, fc1), b2 (1, fc2) f32;   bq (1,) f32 (SMEM scalar)
    Keep fc1/fc2 at multiples of 256 (v6e/v7x MXU) / 128 (v5e) if resized.
    """
    d_in = input_dim + n_actions
    ks = jax.random.split(key, 6)

    def lin(kw, kb, fan_in, fan_out):
        bound = 1.0 / jnp.sqrt(jnp.float32(fan_in))
        w = jax.random.uniform(kw, (fan_in, fan_out), jnp.float32, -bound, bound)
        b = jax.random.uniform(kb, (1, fan_out), jnp.float32, -bound, bound)
        return w, b

    w1, b1 = lin(ks[0], ks[1], d_in, fc1_dims)
    w2, b2 = lin(ks[2], ks[3], fc1_dims, fc2_dims)
    wq, bq = lin(ks[4], ks[5], fc2_dims, 1)

    return (
        w1[:input_dim].astype(jnp.bfloat16),   # w1s (input_dim, fc1)
        w1[input_dim:].astype(jnp.bfloat16),   # w1a (n_actions, fc1)
        b1,                                     # (1, fc1) f32
        w2.astype(jnp.bfloat16),                # (fc1, fc2)
        b2,                                     # (1, fc2) f32
        wq.T.astype(jnp.bfloat16),              # (1, fc2)
        bq.reshape(-1),                         # (1,) f32 (SMEM)
    )


def reference_forward(state, action, params):
    """Pure-JAX reference of the PyTorch forward, using the same (bf16-stored)
    weights upcast to f32, computed in full f32 precision."""
    w1s, w1a, b1, w2, b2, wq, bq = params
    hi = jax.lax.Precision.HIGHEST
    w1 = jnp.concatenate([w1s, w1a], axis=0).astype(jnp.float32)
    w2f = w2.astype(jnp.float32)
    x = jnp.concatenate([state, action], axis=1).astype(jnp.float32)
    h1 = jnp.maximum(jnp.dot(x, w1, precision=hi) + b1, 0.0)
    h2 = jnp.dot(h1, w2f, precision=hi) + b2
    h3 = jnp.maximum(jnp.dot(h2, w2f, precision=hi) + b2, 0.0)
    return jnp.dot(h3, wq.astype(jnp.float32).T, precision=hi) + bq


if __name__ == "__main__":
    key = jax.random.PRNGKey(0)
    k_state, k_action, k_p1, k_p2, k_state2, k_action2 = jax.random.split(key, 6)

    B = 8
    input_dim = 16     # input_dims = [16]
    n_actions = 4

    state = jax.random.normal(k_state, (B, input_dim), jnp.float32)
    action = jax.random.normal(k_action, (B, n_actions), jnp.float32)

    params1 = init_params(k_p1, input_dim, n_actions)
    params2 = init_params(k_p2, input_dim, n_actions)

    # Fused twin-critic dispatch: both SAC Q-networks in one pallas_call.
    q_twin = critic_forward_stacked(state, action, stack_params([params1, params2]))
    q_twin = jax.block_until_ready(q_twin)
    assert q_twin.shape == (2, B, 1), q_twin.shape
    for qi, p in zip(q_twin, (params1, params2)):
        q_ref = reference_forward(state, action, p)
        # Weights are bit-identical (bf16) between kernel and reference; the
        # tolerance covers bf16 MXU operand rounding of the activations.
        assert jnp.allclose(qi, q_ref, atol=2e-2, rtol=2e-2), (qi, q_ref)

    # Single-critic path (n_critics == 1) matches the fused result.
    q1 = jax.block_until_ready(critic_forward(state, action, params1))
    assert q1.shape == (B, 1), q1.shape
    assert jnp.allclose(q1, q_twin[0], atol=1e-5, rtol=1e-5)

    # Training-size batch with no nice divisor exercises multi-tile + padding.
    B2 = 100
    state2 = jax.random.normal(k_state2, (B2, input_dim), jnp.float32)
    action2 = jax.random.normal(k_action2, (B2, n_actions), jnp.float32)
    q2 = jax.block_until_ready(critic_forward(state2, action2, params1))
    q2_ref = reference_forward(state2, action2, params1)
    assert q2.shape == (B2, 1), q2.shape
    assert jnp.allclose(q2, q2_ref, atol=2e-2, rtol=2e-2), (q2, q2_ref)

    print("KERNEL_OK")
</pallas_src>

<mosaic_0001>
module attributes {stable_mosaic.version = 11 : i64} {
  func.func @critic_kernel(%arg0: i32, %arg1: i32, %arg2: memref<8x16xf32, #tpu.memory_space<vmem>>, %arg3: memref<8x4xf32, #tpu.memory_space<vmem>>, %arg4: memref<1x16x256xbf16, #tpu.memory_space<vmem>>, %arg5: memref<1x4x256xbf16, #tpu.memory_space<vmem>>, %arg6: memref<1x1x256xf32, #tpu.memory_space<vmem>>, %arg7: memref<1x256x256xbf16, #tpu.memory_space<vmem>>, %arg8: memref<1x1x256xf32, #tpu.memory_space<vmem>>, %arg9: memref<1x1x256xbf16, #tpu.memory_space<vmem>>, %arg10: memref<2x1xf32, #tpu.memory_space<smem>>, %arg11: memref<1x8x1xf32, #tpu.memory_space<vmem>>) attributes {dimension_semantics = [#tpu.dimension_semantics<parallel>, #tpu.dimension_semantics<parallel>], iteration_bounds = array<i64: 2, 1>, scalar_prefetch = 0 : i64, scratch_operands = 0 : i64, tpu.core_type = #tpu.core_type<tc>, window_params = [{transform_indices = @transform_0, window_bounds = array<i64: 8, 16>}, {transform_indices = @transform_1, window_bounds = array<i64: 8, 4>}, {transform_indices = @transform_2, window_bounds = array<i64: 1, 16, 256>}, {transform_indices = @transform_3, window_bounds = array<i64: 1, 4, 256>}, {transform_indices = @transform_4, window_bounds = array<i64: 1, 1, 256>}, {transform_indices = @transform_5, window_bounds = array<i64: 1, 256, 256>}, {transform_indices = @transform_6, window_bounds = array<i64: 1, 1, 256>}, {transform_indices = @transform_7, window_bounds = array<i64: 1, 1, 256>}, {transform_indices = @transform_8, window_bounds = array<i64: 2, 1>}, {transform_indices = @transform_9, window_bounds = array<i64: 1, 8, 1>}]} {
    %c0 = arith.constant 0 : index
    %c0_0 = arith.constant 0 : index
    %0 = vector.load %arg2[%c0, %c0_0] : memref<8x16xf32, #tpu.memory_space<vmem>>, vector<8x16xf32>
    %1 = arith.truncf %0 : vector<8x16xf32> to vector<8x16xbf16>
    %c0_1 = arith.constant 0 : index
    %c0_2 = arith.constant 0 : index
    %c0_3 = arith.constant 0 : index
    %2 = vector.load %arg4[%c0_1, %c0_2, %c0_3] : memref<1x16x256xbf16, #tpu.memory_space<vmem>>, vector<1x16x256xbf16>
    %3 = vector.shape_cast %2 : vector<1x16x256xbf16> to vector<16x256xbf16>
    %cst = arith.constant dense<0.000000e+00> : vector<8x256xf32>
    %4 = tpu.matmul %1, %3, %cst {dimension_numbers = #tpu.dot_dimension_numbers<[1], [0], [0], [1], [0, 0, 1, 1], [], []>} : vector<8x16xbf16>, vector<16x256xbf16>, vector<8x256xf32> -> vector<8x256xf32>
    %c0_4 = arith.constant 0 : index
    %c0_5 = arith.constant 0 : index
    %5 = vector.load %arg3[%c0_4, %c0_5] : memref<8x4xf32, #tpu.memory_space<vmem>>, vector<8x4xf32>
    %6 = arith.truncf %5 : vector<8x4xf32> to vector<8x4xbf16>
    %c0_6 = arith.constant 0 : index
    %c0_7 = arith.constant 0 : index
    %c0_8 = arith.constant 0 : index
    %7 = vector.load %arg5[%c0_6, %c0_7, %c0_8] : memref<1x4x256xbf16, #tpu.memory_space<vmem>>, vector<1x4x256xbf16>
    %8 = vector.shape_cast %7 : vector<1x4x256xbf16> to vector<4x256xbf16>
    %cst_9 = arith.constant dense<0.000000e+00> : vector<8x256xf32>
    %9 = tpu.matmul %6, %8, %cst_9 {dimension_numbers = #tpu.dot_dimension_numbers<[1], [0], [0], [1], [0, 0, 1, 1], [], []>} : vector<8x4xbf16>, vector<4x256xbf16>, vector<8x256xf32> -> vector<8x256xf32>
    %10 = arith.addf %4, %9 : vector<8x256xf32>
    %c0_10 = arith.constant 0 : index
    %c0_11 = arith.constant 0 : index
    %c0_12 = arith.constant 0 : index
    %11 = vector.load %arg6[%c0_10, %c0_11, %c0_12] : memref<1x1x256xf32, #tpu.memory_space<vmem>>, vector<1x1x256xf32>
    %12 = vector.shape_cast %11 : vector<1x1x256xf32> to vector<1x256xf32>
    %13 = vector.broadcast %12 : vector<1x256xf32> to vector<8x256xf32>
    %14 = arith.addf %10, %13 : vector<8x256xf32>
    %cst_13 = arith.constant 0.000000e+00 : f32
    %15 = vector.broadcast %cst_13 : f32 to vector<8x256xf32>
    %16 = arith.maximumf %14, %15 : vector<8x256xf32>
    %c0_14 = arith.constant 0 : index
    %c0_15 = arith.constant 0 : index
    %c0_16 = arith.constant 0 : index
    %17 = vector.load %arg7[%c0_14, %c0_15, %c0_16] : memref<1x256x256xbf16, #tpu.memory_space<vmem>>, vector<1x256x256xbf16>
    %18 = vector.shape_cast %17 : vector<1x256x256xbf16> to vector<256x256xbf16>
    %c0_17 = arith.constant 0 : index
    %c0_18 = arith.constant 0 : index
    %c0_19 = arith.constant 0 : index
    %19 = vector.load %arg8[%c0_17, %c0_18, %c0_19] : memref<1x1x256xf32, #tpu.memory_space<vmem>>, vector<1x1x256xf32>
    %20 = vector.shape_cast %19 : vector<1x1x256xf32> to vector<1x256xf32>
    %21 = arith.truncf %16 : vector<8x256xf32> to vector<8x256xbf16>
    %cst_20 = arith.constant dense<0.000000e+00> : vector<8x256xf32>
    %22 = tpu.matmul %21, %18, %cst_20 {dimension_numbers = #tpu.dot_dimension_numbers<[1], [0], [0], [1], [0, 0, 1, 1], [], []>} : vector<8x256xbf16>, vector<256x256xbf16>, vector<8x256xf32> -> vector<8x256xf32>
    %23 = vector.broadcast %20 : vector<1x256xf32> to vector<8x256xf32>
    %24 = arith.addf %22, %23 : vector<8x256xf32>
    %25 = arith.truncf %24 : vector<8x256xf32> to vector<8x256xbf16>
    %cst_21 = arith.constant dense<0.000000e+00> : vector<8x256xf32>
    %26 = tpu.matmul %25, %18, %cst_21 {dimension_numbers = #tpu.dot_dimension_numbers<[1], [0], [0], [1], [0, 0, 1, 1], [], []>} : vector<8x256xbf16>, vector<256x256xbf16>, vector<8x256xf32> -> vector<8x256xf32>
    %27 = vector.broadcast %20 : vector<1x256xf32> to vector<8x256xf32>
    %28 = arith.addf %26, %27 : vector<8x256xf32>
    %cst_22 = arith.constant 0.000000e+00 : f32
    %29 = vector.broadcast %cst_22 : f32 to vector<8x256xf32>
    %30 = arith.maximumf %28, %29 : vector<8x256xf32>
    %c0_23 = arith.constant 0 : index
    %c0_24 = arith.constant 0 : index
    %c0_25 = arith.constant 0 : index
    %31 = vector.load %arg9[%c0_23, %c0_24, %c0_25] : memref<1x1x256xbf16, #tpu.memory_space<vmem>>, vector<1x1x256xbf16>
    %32 = vector.shape_cast %31 : vector<1x1x256xbf16> to vector<1x256xbf16>
    %33 = arith.extf %32 : vector<1x256xbf16> to vector<1x256xf32>
    %34 = vector.broadcast %33 : vector<1x256xf32> to vector<8x256xf32>
    %35 = arith.mulf %30, %34 : vector<8x256xf32>
    %cst_26 = arith.constant dense<0.000000e+00> : vector<8xf32>
    %36 = vector.multi_reduction <add>, %35, %cst_26 [1] : vector<8x256xf32> to vector<8xf32>
    %37 = vector.shape_cast %36 : vector<8xf32> to vector<8x1xf32>
    %38 = arith.index_cast %arg0 : i32 to index
    %c0_27 = arith.constant 0 : index
    %39 = memref.load %arg10[%38, %c0_27] : memref<2x1xf32, #tpu.memory_space<smem>>
    %40 = vector.broadcast %39 : f32 to vector<8x1xf32>
    %41 = arith.addf %37, %40 : vector<8x1xf32>
    %c0_28 = arith.constant 0 : index
    %c0_29 = arith.constant 0 : index
    %c0_30 = arith.constant 0 : index
    %42 = vector.load %arg11[%c0_28, %c0_29, %c0_30] : memref<1x8x1xf32, #tpu.memory_space<vmem>>, vector<1x8x1xf32>
    %43 = vector.shape_cast %42 : vector<1x8x1xf32> to vector<8x1xf32>
    %44 = vector.shape_cast %41 : vector<8x1xf32> to vector<1x8x1xf32>
    tpu.vector_store %arg11[%c0_28, %c0_29, %c0_30], %44 {strides = array<i32>} : memref<1x8x1xf32, #tpu.memory_space<vmem>>, vector<1x8x1xf32>,
    return
  }
  func.func @transform_0(%arg0: i32, %arg1: i32) -> (i32, i32) {
    %c0_i32 = arith.constant 0 : i32
    %c0_i32_0 = arith.constant 0 : i32
    return %arg1, %c0_i32 : i32, i32
  }
  func.func @transform_1(%arg0: i32, %arg1: i32) -> (i32, i32) {
    %c0_i32 = arith.constant 0 : i32
    %c0_i32_0 = arith.constant 0 : i32
    return %arg1, %c0_i32 : i32, i32
  }
  func.func @transform_2(%arg0: i32, %arg1: i32) -> (i32, i32, i32) {
    %c0_i32 = arith.constant 0 : i32
    %c0_i32_0 = arith.constant 0 : i32
    %c0_i32_1 = arith.constant 0 : i32
    return %arg0, %c0_i32, %c0_i32_0 : i32, i32, i32
  }
  func.func @transform_3(%arg0: i32, %arg1: i32) -> (i32, i32, i32) {
    %c0_i32 = arith.constant 0 : i32
    %c0_i32_0 = arith.constant 0 : i32
    %c0_i32_1 = arith.constant 0 : i32
    return %arg0, %c0_i32, %c0_i32_0 : i32, i32, i32
  }
  func.func @transform_4(%arg0: i32, %arg1: i32) -> (i32, i32, i32) {
    %c0_i32 = arith.constant 0 : i32
    %c0_i32_0 = arith.constant 0 : i32
    %c0_i32_1 = arith.constant 0 : i32
    return %arg0, %c0_i32, %c0_i32_0 : i32, i32, i32
  }
  func.func @transform_5(%arg0: i32, %arg1: i32) -> (i32, i32, i32) {
    %c0_i32 = arith.constant 0 : i32
    %c0_i32_0 = arith.constant 0 : i32
    %c0_i32_1 = arith.constant 0 : i32
    return %arg0, %c0_i32, %c0_i32_0 : i32, i32, i32
  }
  func.func @transform_6(%arg0: i32, %arg1: i32) -> (i32, i32, i32) {
    %c0_i32 = arith.constant 0 : i32
    %c0_i32_0 = arith.constant 0 : i32
    %c0_i32_1 = arith.constant 0 : i32
    return %arg0, %c0_i32, %c0_i32_0 : i32, i32, i32
  }
  func.func @transform_7(%arg0: i32, %arg1: i32) -> (i32, i32, i32) {
    %c0_i32 = arith.constant 0 : i32
    %c0_i32_0 = arith.constant 0 : i32
    %c0_i32_1 = arith.constant 0 : i32
    return %arg0, %c0_i32, %c0_i32_0 : i32, i32, i32
  }
  func.func @transform_8(%arg0: i32, %arg1: i32) -> (i32, i32) {
    %c0_i32 = arith.constant 0 : i32
    %c0_i32_0 = arith.constant 0 : i32
    %c0_i32_1 = arith.constant 0 : i32
    return %c0_i32, %c0_i32_0 : i32, i32
  }
  func.func @transform_9(%arg0: i32, %arg1: i32) -> (i32, i32, i32) {
    %c0_i32 = arith.constant 0 : i32
    %c0_i32_0 = arith.constant 0 : i32
    return %arg0, %arg1, %c0_i32 : i32, i32, i32
  }
}

</mosaic_0001>

<bundles_post_ra>
// kernel: tpu_custom_call.1
= control target key start
LH: loop header
LB: loop body
LE: loop exit
PB: predicated region body
PF: predicated region fallthrough
CT: control target
= control target key end

     0   :  { %s1775_s0 = inlined_call_operand.vmem [shape: f32[8,16], index: 0, kind: input, shape index: {}]   ;;  %s1776_s1 = inlined_call_operand.vmem [shape: f32[8,4], index: 1, kind: input, shape index: {}]   ;;  %s1777_s2 = inlined_call_operand.hbm [shape: bf16[2,16,256], index: 2, kind: input, shape index: {}]   ;;  %s1778_s3 = inlined_call_operand.vmem [shape: bf16[2,4,256], index: 3, kind: input, shape index: {}]   ;;  %s1779_s4 = inlined_call_operand.vmem [shape: f32[2,1,256], index: 4, kind: input, shape index: {}]   ;;  %s1780_s5 = inlined_call_operand.hbm [shape: bf16[2,256,256], index: 5, kind: input, shape index: {}]   ;;  %s1781_s6 = inlined_call_operand.vmem [shape: f32[2,1,256], index: 6, kind: input, shape index: {}]   ;;  %s1782_s7 = inlined_call_operand.vmem [shape: bf16[2,1,256], index: 7, kind: input, shape index: {}]   ;;  %s1783_s8 = inlined_call_operand.vmem [shape: f32[2,1], index: 8, kind: input, shape index: {}]   ;;  %s1784_s9 = inlined_call_operand.vmem [shape: f32[2,8,1], index: 9, kind: output, shape index: {}]  }
   0x1   :  { %1789 = sst [smem:[#allocation13_spill]] %s1777_s2 }
   0x2   :  { %1790 = sst [smem:[#allocation14_spill]] %s1781_s6 }
   0x3   :  { %1791 = sst [smem:[#allocation15_spill]] %s1782_s7 }
   0x4   :  { %1792 = sst [smem:[#allocation16_spill]] %s1783_s8 }
   0x5   :  { %1793 = sst [smem:[#allocation17_spill]] %s1784_s9 }
   0x6   :  { %14 = vsyncpa [#allocation3], 0 }
   0x7   :  { %16 = vsyncpa [#allocation3 + $0x1], 0 }
   0x8   :  { %17 = vsyncpa [#allocation6], 0 }
   0x9   :  { %19 = vsyncpa [#allocation6 + $0x1], 0 }
   0xa   :  { %20 = vsyncpa [#allocation4], 0  ;;  %s1569_s30 = smov 0   ;;  %s1571_s10 = smov 0  }
   0xb   :  { %s1573_s11 = smov 0   ;;  %s1575_s12 = smov 0  }
   0xc   :  { %s1577_s13 = smov 0   ;;  %s1579_s14 = smov 0  }
   0xd LB: > { %1794 = sst [smem:[#allocation11_spill]] %s1511_s14  ;;  %s1190_s15 = sadd.s32 4294967295, %s1511_s14   ;;  %s1511_s14 = sphi %s1579_s14, %s26_s14   ;;  %s1507_s13 = sphi %s1577_s13, %s1815_s13   ;;  %s1503_s12 = sphi %s1575_s12, %s1814_s12   ;;  %s1499_s11 = sphi %s1573_s11, %s1813_s11   ;;  %s1495_s10 = sphi %s1571_s10, %s1812_s10   ;;  %s1491_s30 = sphi %s1569_s30, %s1811_s30  }
   0xe   : > { %p104_p0 = scmp.ne.s32.totalorder %s1499_s11, %s1495_s10  ;;  %p105_p1 = scmp.eq.s32.totalorder %s1511_s14, 0 }
   0xf   : > { %p110_p2 = scmp.ne.s32.totalorder %s1495_s10, %s1491_s30  ;;  %p1603_p3 = scmp.eq.s32.totalorder %s1190_s15, 0 }
  0x10   : > { %p106_p4 = por %p105_p1, %p104_p0  ;;  %p1192_p5 = scmp.ge.s32.totalorder %s1511_s14, 1 }
  0x11   : > { %p1610_p6 = por %p1603_p3, %p110_p2  ;;  %p300_p7 = scmp.lt.s32.totalorder %s1511_s14, 3 }
  0x12   : > { %s1797_s8 = sld [smem:[#allocation16_spill]]  ;;  %p1277_p10 = scmp.lt.s32.totalorder %s1511_s14, 2 }
  0x13   : > { %s1796_s18 = scalar_select %p1610_p6, 1, 0 }
  0x14   : > { %p1618_p8 = pnand %p1192_p5, %p300_p7  ;;  %s1626_s23 = sand.u32 1, %s1499_s11  }
  0x15   : > { %p1630_p12 = pnand %p1277_p10, %p106_p4 }
  0x16   : > { %s1798_s22 = scalar_select %p1618_p8, 1, 0 }
  0x17   : > { %p1265_p9 = pneg %p1618_p8 }
  0x18   : > { %s327_s21 = sshll.u32 %s1797_s8, 4  ;;  %s328_s21 = int_to_ptr.vmem [resolvable:$true] %s327_s21 }
  0x19   : > { %p1266_p11 = pnand %p1265_p9, %p1603_p3  ;;  %s1382_s25 = scalar_lea.vmem %s328_s21, 32 }
  0x1a   : > { %p1383_p13 = scmp.ne.s32.totalorder %s328_s21, %s1382_s25  ;;  %p1390_p5 = scmp.lt.s32.totalorder %s328_s21, %s328_s21 }
  0x1b   : > { %p1384_p0 = pneg %p1266_p11  ;;  %p1391_p7 = scmp.lt.s32.totalorder %s1382_s25, %s1382_s25 }
  0x1d   : > { %p1385_p1 = pnand %p1384_p0, %p1383_p13  ;;  %p1392_p6 = por %p1391_p7, %p1390_p5 }
  0x1f   : > { %p1386_p2 = pneg %p1385_p1 }
  0x21   : > { %p1393_p8 = pnand %p1392_p6, %p1386_p2 }
  0x23   : > { %1396 = shalt.err (!%p1393_p8)
}
  0x24   : > { %s1513_s26 = smov [#allocation7]   ;;  %s38_s27 = sadd.s32 1, %s1507_s13 }
  0x25   : > { %1268 = dma.vmem_to_smem (!%p1266_p11), %s328_s21, 32, %s1513_s26, [#allocation4]  }
  0x26   : > { %s1197_s28 = sshll.u32 %s1626_s23, 4  ;;  %p40_p4 = scmp.ge.s32.totalorder %s38_s27, 2 }
  0x27   : > { %s1254_s29 = sshll.u32 %s1507_s13, 8  ;;  %s342_s30 = scalar_lea.vmem [#allocation2], %s1197_s28 }
  0x28   : > { %s349_s15 = sshll.u32 %s342_s30, 4  ;;  %s1817_s27 = smov (%p40_p4, %s38_s27), 0  ;;  %s350_s15 = int_to_ptr.vmem [resolvable:$true] %s349_s15 }
  0x29   : > { %1800 = sst [smem:[#allocation12_spill]] %s1817_s27  ;;  %s94_s16 = ssub.s32 %s1507_s13, %s1817_s27 }
  0x2a   : > { %s1801_s2 = sld [smem:[#allocation13_spill]]  ;;  %p1644_p6 = scmp.eq.s32.totalorder %s94_s16, 0 }
  0x2b   : > { %s339_s21 = scalar_lea.sflag [#allocation3], %s1626_s23  ;;  %p1399_p8 = pneg %p1630_p12 }
  0x2c   : > { %s1410_s26 = scalar_lea.vmem %s350_s15, 256  ;;  %s1514_s28 = smov [#allocation2]  }
  0x2d   : > { %p1411_p9 = scmp.ne.s32.totalorder %s350_s15, %s1410_s26  ;;  %s1415_s30 = sshll.u32 %s1514_s28, 4  ;;  %s1416_s30 = int_to_ptr.vmem [resolvable:$false] %s1415_s30 }
  0x2e   : > { %s1417_s19 = scalar_lea.vmem %s1416_s30, 512  ;;  %p1418_p13 = scmp.lt.s32.totalorder %s350_s15, %s1416_s30 }
  0x2f   : > { %p1413_p10 = pnand %p1411_p9, %p1399_p8  ;;  %p1419_p0 = scmp.lt.s32.totalorder %s1417_s19, %s1410_s26 }
  0x30   : > { %s348_s25 = scalar_lea.hbm %s1801_s2, %s1254_s29 }
  0x31   : > { %p1414_p11 = pneg %p1413_p10  ;;  %p1420_p1 = por %p1419_p0, %p1418_p13 }
  0x33   : > { %p1421_p2 = pnand %p1420_p1, %p1414_p11 }
  0x35   : > { %1424 = shalt.err (!%p1421_p2)
}
  0x36   : > { %s1515_s16 = smov 128   ;;  %s1516_s29 = smov 8  }
  0x37   : > { %1272 = dma.hbm_to_vmem [thread:$0]  (!%p1630_p12), %s348_s25, 256, %s350_s15, %s339_s21, %s1515_s16, %s1515_s16, %s1516_s29  }
  0x38   : > { %s1803_s20 = sadd.s32 1, %s1499_s11  ;;  %s1200_s26 = sshll.u32 %s1626_s23, 8 }
  0x39   : > { %s1661_s28 = scalar_select %p1644_p6, %s1499_s11, %s1803_s20  }
  0x3a   : > { %s1255_s30 = sshll.u32 %s1507_s13, 12  ;;  %s378_s14 = scalar_lea.vmem [#allocation5], %s1200_s26 }
  0x3b   : > { %s384_s27 = scalar_lea.hbm %s1780_s5, %s1255_s30  ;;  %s385_s9 = sshll.u32 %s378_s14, 4  ;;  %s386_s9 = int_to_ptr.vmem [resolvable:$true] %s385_s9 }
  0x3c   : > { %s375_s7 = scalar_lea.sflag [#allocation6], %s1626_s23  ;;  %s1438_s6 = scalar_lea.vmem %s386_s9, 4096 }
  0x3d   : > { %p1439_p5 = scmp.ne.s32.totalorder %s386_s9, %s1438_s6  ;;  %s1517_s15 = smov [#allocation5]  }
  0x3e   : > { %s1443_s8 = sshll.u32 %s1517_s15, 4  ;;  %s1444_s8 = int_to_ptr.vmem [resolvable:$false] %s1443_s8 }
  0x3f   : > { %p1441_p7 = pnand %p1439_p5, %p1399_p8  ;;  %s1445_s25 = scalar_lea.vmem %s1444_s8, 8192 }
  0x40   : > { %p1446_p6 = scmp.lt.s32.totalorder %s386_s9, %s1444_s8  ;;  %p1447_p9 = scmp.lt.s32.totalorder %s1445_s25, %s1438_s6 }
  0x41   : > { %p1442_p4 = pneg %p1441_p7 }
  0x42   : > { %p1448_p10 = por %p1447_p9, %p1446_p6 }
  0x44   : > { %p1449_p11 = pnand %p1448_p10, %p1442_p4 }
  0x46   : > { %1452 = shalt.err (!%p1449_p11)
}
  0x47   : > { %1275 = dma.hbm_to_vmem [thread:$0]  (!%p1630_p12), %s384_s27, 4096, %s386_s9, %s375_s7, %s1515_s16, %s1515_s16, %s1516_s29  }
  0x48   : > { %p1804_p13 = scmp.ne.s32.totalorder %s1798_s22, 0 }
  0x49   : > { %s413_s2 = sand.u32 (!%p1804_p13), 1, %s1495_s10   ;;  %p1805_p8 = scmp.ne.s32.totalorder (!%p1804_p13), %s1796_s18, 0 }
  0x4a   : > { %411 = sbr.rel (%p1804_p13) target bundleno = 848 (0x350), region = 56  ;;  %s1204_s14 = sshll.u32 (!%p1804_p13), %s413_s2, 4 }
  0x4b   : > { %s414_s23 = scalar_lea.sflag (!%p1804_p13), [#allocation3], %s413_s2  ;;  %s417_s21 = scalar_lea.vmem (!%p1804_p13), [#allocation2], %s1204_s14 }
  0x4f   : > { %1478 = dma.done.wait (%p1805_p8), %s414_s23, 256  }
  0x50   : > { %1480 = vsyncadd (%p1805_p8), %s414_s23, 4294967040  ;;  %s1205_s6 = sshll.u32 %s413_s2, 8  ;;  %s423_s20 = scalar_lea.sflag [#allocation6], %s413_s2 }
  0x51   : > { %s1681_s26 = scalar_lea.vmem [#allocation5], %s1205_s6 }
  0x52   : > { %1482 = dma.done.wait (%p1805_p8), %s423_s20, 4096  }
  0x53   : > { %1484 = vsyncadd (%p1805_p8), %s423_s20, 4294963200 }
  0x54   : > { %1486 = dma.done.wait (%p1603_p3), [#allocation4], 32  }
  0x55   : > { %1488 = vsyncadd (%p1603_p3), [#allocation4], 4294967264 }
  0x56   : > { %435 = sfence }
  0x57   : > { %v1331_v0 = vld [vmem:[%s417_s21 + $0x4] ss:$8 sps:$4 sm:$0xff]   ;;  %v1333_v1 = vld [vmem:[%s417_s21] ss:$8 sps:$4 sm:$0xff]   ;;  %v1518_v2 = vmov 0   ;;  %p506_p12 = scmp.lt.s32.totalorder %s1503_s12, 1  ;;  %v656_v42 = vlaneseq }
  0x58   : > { %645 = vmatprep.mubr.bf16.mxu1 %v1518_v2  ;;  %v531_v3 = vld [vmem:[%s1775_s0] sm:$0xff]  ;;  %590 = vmatprep.mubr.bf16.mxu0 %v1518_v2  ;;  %vm609_vm0 = vcmask 130048   ;;  %v1336_v5 = vld [vmem:[%s1681_s26 + $0x74] ss:$8 sps:$4 sm:$0xff]   ;;  %vm551_vm1 = vcmask 1041408   ;;  %vm547_vm2 = vcmask 31744  }
  0x59   : > { %627 = vmatprep.subr.bf16.mxu1 %v1331_v0  ;;  %v532_v4 = vpack.c.bf16 %v531_v3, %v531_v3  ;;  %s1696_s17 = scalar_select %p506_p12, %s1503_s12, 1  ;;  %v1334_v6 = vld [vmem:[%s1681_s26 + $0x70] ss:$8 sps:$4 sm:$0xff]   ;;  %v1339_v7 = vld [vmem:[%s1681_s26 + $0x64] ss:$8 sps:$4 sm:$0xff]   ;;  %v657_v43 = vshrl.u32 %v656_v42, 7 }
  0x5a   : > { %628 = vmatpush1.bf16.msra.mxu1 %v1333_v1  ;;  %v535_v9 = vld [vmem:[%s1776_s1] sm:$0xff]  ;;  %v1342_v14 = vld [vmem:[%s1681_s26 + $0x54] ss:$8 sps:$4 sm:$0xff]   ;;  %v1340_v15 = vld [vmem:[%s1681_s26 + $0x50] ss:$8 sps:$4 sm:$0xff]   ;;  %s1806_s14 = sld [smem:[#allocation14_spill]] }
  0x5b   : > { %s1256_s18 = sshll.u32 %s1696_s17, 2  ;;  %919 = vmatprep.subr.bf16.mxu1 %v1336_v5  ;;  %v1337_v12 = vld [vmem:[%s1681_s26 + $0x60] ss:$8 sps:$4 sm:$0xff]   ;;  %v536_v13 = vpack.c.bf16 %v535_v9, %v535_v9  ;;  %v1345_v16 = vld [vmem:[%s1681_s26 + $0x44] ss:$8 sps:$4 sm:$0xff]   ;;  %s1738_s30 = sshll.u32 %s1696_s17, 1 }
  0x5c   : > { %s510_s27 = scalar_lea.vmem %s1778_s3, %s1256_s18  ;;  %v1343_v17 = vld [vmem:[%s1681_s26 + $0x40] ss:$8 sps:$4 sm:$0xff]   ;;  %v1348_v18 = vld [vmem:[%s1681_s26 + $0x34] ss:$8 sps:$4 sm:$0xff]   ;;  %v1346_v19 = vld [vmem:[%s1681_s26 + $0x30] ss:$8 sps:$4 sm:$0xff]   ;;  %s514_s8 = scalar_lea.vmem %s1779_s4, %s1738_s30 }
  0x5d   : > { %1218 = vmatmul.mubr.msk.bf16.vlgmr.msra.gmra.mxu1 %vm609_vm0, %v532_v4  ;;  %v1213_v8 = vld.sshfl [vmem:[%s510_s27] sm:$0x33 pattern:$0x76325410]  ;;  %v1351_v20 = vld [vmem:[%s1681_s26 + $0x24] ss:$8 sps:$4 sm:$0xff]  }
  0x5e   : > { %920 = vmatpush1.bf16.msra.mxu1 %v1334_v6  ;;  %v546_v10 = vcombine.high %v1213_v8, %v1213_v8  ;;  %v553_v11 = vsel %vm551_vm1, %v1213_v8, 0  ;;  %v1349_v21 = vld [vmem:[%s1681_s26 + $0x20] ss:$8 sps:$4 sm:$0xff]   ;;  %v1354_v22 = vld [vmem:[%s1681_s26 + $0x14] ss:$8 sps:$4 sm:$0xff]   ;;  %v658_v46 = vsub.s32 0, %v657_v43 }
  0x5f   : > { %921 = vmatprep.subr.bf16.mxu1 %v1339_v7  ;;  %v1352_v23 = vld [vmem:[%s1681_s26 + $0x10] ss:$8 sps:$4 sm:$0xff]   ;;  %v1357_v24 = vld [vmem:[%s1681_s26 + $0x4] ss:$8 sps:$4 sm:$0xff]   ;;  %v1355_v25 = vld [vmem:[%s1681_s26] ss:$8 sps:$4 sm:$0xff]  }
  0x60   : > { %1214 = vmatprep.subr.msk.bf16.mxu0 %vm551_vm1, %v546_v10  ;;  %v1360_v26 = vld [vmem:[%s1681_s26 + $0xf4] ss:$8 sps:$4 sm:$0xff]   ;;  %v1358_v27 = vld [vmem:[%s1681_s26 + $0xf0] ss:$8 sps:$4 sm:$0xff]   ;;  %v1363_v28 = vld [vmem:[%s1681_s26 + $0xe4] ss:$8 sps:$4 sm:$0xff]   ;;  %s518_s23 = scalar_lea.vmem %s1806_s14, %s1738_s30 }
  0x61   : > { %573 = vmatpush1.bf16.msra.mxu0 %v553_v11  ;;  %v1361_v29 = vld [vmem:[%s1681_s26 + $0xe0] ss:$8 sps:$4 sm:$0xff]   ;;  %v1366_v30 = vld [vmem:[%s1681_s26 + $0xd4] ss:$8 sps:$4 sm:$0xff]   ;;  %v1364_v31 = vld [vmem:[%s1681_s26 + $0xd0] ss:$8 sps:$4 sm:$0xff]  }
  0x62   : > { %922 = vmatpush1.bf16.msra.mxu1 %v1337_v12  ;;  %876 = vmatprep.subr.bf16.mxu0 %v1336_v5  ;;  %v1369_v32 = vld [vmem:[%s1681_s26 + $0xc4] ss:$8 sps:$4 sm:$0xff]   ;;  %v1367_v33 = vld [vmem:[%s1681_s26 + $0xc0] ss:$8 sps:$4 sm:$0xff]   ;;  %v1370_v34 = vld [vmem:[%s1681_s26 + $0xb0] ss:$8 sps:$4 sm:$0xff]  }
  0x63   : > { %923 = vmatprep.subr.bf16.mxu1 %v1342_v14  ;;  %v1372_v35 = vld [vmem:[%s1681_s26 + $0xb4] ss:$8 sps:$4 sm:$0xff]   ;;  %v1375_v36 = vld [vmem:[%s1681_s26 + $0xa4] ss:$8 sps:$4 sm:$0xff]   ;;  %v1373_v37 = vld [vmem:[%s1681_s26 + $0xa0] ss:$8 sps:$4 sm:$0xff]  }
  0x64   : > { %1215 = vmatmul.mubr.msk.bf16.vlgmr.msra.gmra.mxu0 %vm547_vm2, %v536_v13  ;;  %v1378_v38 = vld [vmem:[%s1681_s26 + $0x94] ss:$8 sps:$4 sm:$0xff]   ;;  %v1376_v39 = vld [vmem:[%s1681_s26 + $0x90] ss:$8 sps:$4 sm:$0xff]   ;;  %v1381_v40 = vld [vmem:[%s1681_s26 + $0x84] ss:$8 sps:$4 sm:$0xff]  }
  0x65   : > { %877 = vmatpush1.bf16.msra.mxu0 %v1334_v6  ;;  %v1379_v41 = vld [vmem:[%s1681_s26 + $0x80] ss:$8 sps:$4 sm:$0xff]   ;;  %v662_v49 = vsub.s32 1, %v657_v43  ;;  %s1807_s20 = sld [smem:[#allocation15_spill]]  ;;  %s1251_s7 = sshll.u32 %s1503_s12, 7  ;;  %vm992_vm3 = vcmask 7168  }
  0x66   : > { %924 = vmatpush1.bf16.msra.mxu1 %v1340_v15  ;;  %878 = vmatprep.subr.bf16.mxu0 %v1339_v7  ;;  %v654_v48 = vld [vmem:[%s514_s8] sm:$0x3]  ;;  %s989_s9 = sld [smem:[#allocation7 + %s1251_s7]]  ;;  %s1212_s18 = sshll.u32 %s1696_s17, 3 }
  0x67   : > { %925 = vmatprep.subr.bf16.mxu1 %v1345_v16  ;;  %v659_v51 = vrot.slane %v654_v48, %v658_v46  ;;  %v663_v54 = vrot.slane %v654_v48, %v662_v49  ;;  %v702_v1 = vld [vmem:[%s518_s23] sm:$0x3]  ;;  %s1808_s27 = sld [smem:[#allocation17_spill]] }
  0x68   : > { %v709_v2 = vrot.slane %v702_v1, %v658_v46  ;;  %v713_v3 = vrot.slane %v702_v1, %v662_v49 }
  0x69   : > { %879 = vmatpush1.bf16.msra.mxu0 %v1337_v12 }
  0x6a   : > { %926 = vmatpush1.bf16.msra.mxu1 %v1343_v17  ;;  %880 = vmatprep.subr.bf16.mxu0 %v1342_v14  ;;  %v971_v14 = vsub.s32 2, %v657_v43 }
  0x6b   : > { %927 = vmatprep.subr.bf16.mxu1 %v1348_v18  ;;  %s522_s26 = scalar_lea.vmem %s1807_s20, %s1738_s30 }
  0x6c   : > { %v962_v12 = vld [vmem:[%s522_s26] sm:$0x3] }
  0x6d   : > { %881 = vmatpush1.bf16.msra.mxu0 %v1340_v15  ;;  %v963_v13 = vunpack.c.l.bf16 %v962_v12  ;;  %s529_s16 = scalar_lea.vmem %s1808_s27, %s1212_s18 }
  0x6e   : > { %928 = vmatpush1.bf16.msra.mxu1 %v1346_v19  ;;  %882 = vmatprep.subr.bf16.mxu0 %v1345_v16 }
  0x6f   : > { %929 = vmatprep.subr.bf16.mxu1 %v1351_v20  ;;  %v968_v15 = vrot.slane %v963_v13, %v658_v46  ;;  %v972_v16 = vrot.slane %v963_v13, %v971_v14 }
  0x71   : > { %883 = vmatpush1.bf16.msra.mxu0 %v1343_v17 }
  0x72   : > { %930 = vmatpush1.bf16.msra.mxu1 %v1349_v21  ;;  %884 = vmatprep.subr.bf16.mxu0 %v1348_v18 }
  0x73   : > { %931 = vmatprep.subr.bf16.mxu1 %v1354_v22 }
  0x75   : > { %885 = vmatpush1.bf16.msra.mxu0 %v1346_v19 }
  0x76   : > { %932 = vmatpush1.bf16.msra.mxu1 %v1352_v23  ;;  %886 = vmatprep.subr.bf16.mxu0 %v1351_v20 }
  0x77   : > { %933 = vmatprep.subr.bf16.mxu1 %v1357_v24 }
  0x79   : > { %887 = vmatpush1.bf16.msra.mxu0 %v1349_v21 }
  0x7a   : > { %934 = vmatpush1.bf16.msra.mxu1 %v1355_v25  ;;  %888 = vmatprep.subr.bf16.mxu0 %v1354_v22  ;;  %v978_v22 = vrot.slane %v968_v15, %v658_v46 }
  0x7b   : > { %935 = vmatprep.subr.bf16.mxu1 %v1360_v26 }
  0x7d   : > { %889 = vmatpush1.bf16.msra.mxu0 %v1352_v23  ;;  %v982_v23 = vrot.slane %v972_v16, %v658_v46 }
  0x7e   : > { %936 = vmatpush2.bf16.msra.mxu1 %v1358_v27  ;;  %890 = vmatprep.subr.bf16.mxu0 %v1357_v24 }
  0x7f   : > { %937 = vmatprep.subr.bf16.mxu1 %v1363_v28 }
  0x81   : > { %891 = vmatpush1.bf16.msra.mxu0 %v1355_v25 }
  0x82   : > { %938 = vmatpush2.bf16.msra.mxu1 %v1361_v29  ;;  %892 = vmatprep.subr.bf16.mxu0 %v1360_v26 }
  0x83   : > { %939 = vmatprep.subr.bf16.mxu1 %v1366_v30 }
  0x85   : > { %893 = vmatpush2.bf16.msra.mxu0 %v1358_v27 }
  0x86   : > { %940 = vmatpush2.bf16.msra.mxu1 %v1364_v31  ;;  %894 = vmatprep.subr.bf16.mxu0 %v1363_v28 }
  0x87   : > { %941 = vmatprep.subr.bf16.mxu1 %v1369_v32 }
  0x89   : > { %895 = vmatpush2.bf16.msra.mxu0 %v1361_v29 }
  0x8a   : > { %942 = vmatpush2.bf16.msra.mxu1 %v1367_v33  ;;  %896 = vmatprep.subr.bf16.mxu0 %v1366_v30  ;;  %v990_v30 = vstv %s989_s9 }
  0x8b   : > { %943 = vmatprep.subr.bf16.mxu1 %v1372_v35 }
  0x8d   : > { %897 = vmatpush2.bf16.msra.mxu0 %v1364_v31 }
  0x8e   : > { %898 = vmatprep.subr.bf16.mxu0 %v1369_v32  ;;  %944 = vmatpush2.bf16.msra.mxu1 %v1370_v34 }
  0x8f   : > { %945 = vmatprep.subr.bf16.mxu1 %v1375_v36 }
  0x91   : > { %899 = vmatpush2.bf16.msra.mxu0 %v1367_v33 }
  0x92   : > { %900 = vmatprep.subr.bf16.mxu0 %v1372_v35  ;;  %946 = vmatpush2.bf16.msra.mxu1 %v1373_v37 }
  0x93   : > { %947 = vmatprep.subr.bf16.mxu1 %v1378_v38 }
  0x95   : > { %901 = vmatpush2.bf16.msra.mxu0 %v1370_v34 }
  0x96   : > { %902 = vmatprep.subr.bf16.mxu0 %v1375_v36  ;;  %948 = vmatpush2.bf16.msra.mxu1 %v1376_v39 }
  0x97   : > { %949 = vmatprep.subr.bf16.mxu1 %v1381_v40 }
  0x99   : > { %903 = vmatpush2.bf16.msra.mxu0 %v1373_v37 }
  0x9a   : > { %904 = vmatprep.subr.bf16.mxu0 %v1378_v38  ;;  %950 = vmatpush2.bf16.msra.mxu1 %v1379_v41 }
  0x9d   : > { %905 = vmatpush2.bf16.msra.mxu0 %v1376_v39 }
  0x9e   : > { %906 = vmatprep.subr.bf16.mxu0 %v1381_v40 }
  0xa1   : > { %907 = vmatpush2.bf16.msra.mxu0 %v1379_v41 }
 0x11d   : > { %v647_v44 = vpop.f32.mrf.mxu1 }
 0x11f   : > { %v649_v45 = vpop.f32.mrf.mxu1 }
 0x121   : > { %v651_v47 = vpop.f32.mrf.mxu1 }
 0x123   : > { %v652_v50 = vpop.f32.mrf.mxu1 }
 0x124   : > { %v592_v52 = vpop.f32.mrf.mxu0 }
 0x125   : > { %v648_v53 = vadd.f32 %v647_v44, %v592_v52 }
 0x126   : > { %v594_v55 = vpop.f32.mrf.mxu0 }
 0x127   : > { %v666_v56 = vadd.f32 %v659_v51, %v648_v53  ;;  %v650_v57 = vadd.f32 %v649_v45, %v594_v55 }
 0x128   : > { %v596_v58 = vpop.f32.mrf.mxu0 }
 0x129   : > { %v667_v59 = vadd.f32 %v663_v54, %v650_v57  ;;  %v668_v60 = vmax.f32 %v666_v56, 0.0 }
 0x12a   : > { %v597_v61 = vpop.f32.mrf.mxu0 }
 0x12b   : > { %v669_v62 = vmax.f32 %v667_v59, 0.0  ;;  %v703_v0 = vpack.c.bf16 %v668_v60, %v668_v60 }
 0x12d   : > { %v704_v63 = vpack.c.bf16 %v669_v62, %v669_v62 }
 0x12f   : > { %908 = vmatprep.mubr.bf16.mxu0 %v704_v63 }
 0x130   : > { %909 = vmatmul.mubr.bf16.vlgmr.msra.gmra.mxu0 %v703_v0 }
 0x1f0   : > { %v910_v4 = vpop.f32.mrf.mxu0 }
 0x1f1   : > { %v911_v5 = vadd.f32 %v910_v4, %v709_v2 }
 0x1f2   : > { %v912_v6 = vpop.f32.mrf.mxu0 }
 0x1f3   : > { %v913_v7 = vadd.f32 %v912_v6, %v713_v3  ;;  %v917_v10 = vpack.c.bf16 %v911_v5, %v911_v5 }
 0x1f4   : > { %v914_v8 = vpop.f32.mrf.mxu0 }
 0x1f5   : > { %v918_v9 = vpack.c.bf16 %v913_v7, %v913_v7 }
 0x1f6   : > { %v915_v11 = vpop.f32.mrf.mxu0 }
 0x1f7   : > { %951 = vmatprep.mubr.bf16.mxu1 %v918_v9 }
 0x1f8   : > { %952 = vmatmul.mubr.bf16.vlgmr.msra.gmra.mxu1 %v917_v10 }
 0x2b8   : > { %v953_v17 = vpop.f32.mrf.mxu1 }
 0x2b9   : > { %v954_v18 = vadd.f32 %v953_v17, %v709_v2 }
 0x2ba   : > { %v955_v19 = vpop.f32.mrf.mxu1 }
 0x2bb   : > { %v960_v20 = vmax.f32 %v954_v18, 0.0  ;;  %v956_v21 = vadd.f32 %v955_v19, %v713_v3 }
 0x2bc   : > { %v957_v24 = vpop.f32.mrf.mxu1 }
 0x2bd   : > { %v961_v25 = vmax.f32 %v956_v21, 0.0  ;;  %v983_v27 = vmul.f32 %v978_v22, %v960_v20 }
 0x2be   : > { %v958_v26 = vpop.f32.mrf.mxu1 }
 0x2bf   : > { %v984_v28 = vmul.f32 %v982_v23, %v961_v25 }
 0x2c1   : > { %v985_v29 = vadd.f32 %v984_v28, %v983_v27 }
 0x2c3   : > { %986 = vadd.xlane.f32.xlu0 %v985_v29 }
 0x34c   : > { %v987_v31 = vpop.xlane.xlu0 %986 }
 0x34d   : > { %v991_v32 = vadd.f32 %v990_v30, %v987_v31 }
 0x34f   : > { %993 = vst.msk [vmem:[%s529_s16] sm:$0xff] %vm992_vm3, %v991_v32 }
 0x350 PF: > { %s1809_s29 = sld [smem:[#allocation11_spill]]  ;;  %s1811_s30 = smov %s1495_s10 }
 0x351   : > { %s1810_s19 = sld [smem:[#allocation12_spill]]  ;;  %s1812_s10 = smov %s1499_s11 }
 0x352   : > { %s1813_s11 = smov %s1661_s28  ;;  %s1814_s12 = smov %s1507_s13 }
 0x356   : > { %s26_s14 = sadd.s32 1, %s1809_s29  }
 0x357   : > { %p23_p3 = scmp.ge.s32.totalorder %s26_s14, 4   ;;  %s1815_s13 = smov %s1810_s19 }
 0x359   :  { %25 = sbr.rel (!%p23_p3) target bundleno = 13 (0xd), region = 132 }
 0x35e   :  { %1019 = vsyncpa [#allocation3], 1 }
 0x35f   :  { %1021 = vsyncpa [#allocation3 + $0x1], 1 }
 0x360   :  { %1022 = vsyncpa [#allocation6], 1 }
 0x361   :  { %1024 = vsyncpa [#allocation6 + $0x1], 1 }
 0x362   :  { %1025 = vsyncpa [#allocation4], 1 }
 0x363   :  { %1027 = vsyncpa [#allocation4 + $0x1], 1 }

</bundles_post_ra>
